<compile_context>
chip_gen: v7x
topology: tpu7x:2x2x1
jax: 0.10.0
libtpu: 0.0.40
codegen_flags: <defaults>
</compile_context>

<pallas_src>
import numpy as np
import jax
import jax.numpy as jnp
from jax.experimental import pallas as pl
from jax.experimental.pallas import tpu as pltpu

NUM_QUBITS = 2              # wrapper.num_qubits
DIM = 2 ** NUM_QUBITS       # statevector dimension
TWO_DIM = 2 * DIM           # packed (re|im) rows == 8 sublanes exactly
PULSE_ARRAY = (3, 3)        # pulses per drive channel (len == NUM_QUBITS)
LANE = 128
SPLIT_THRESHOLD_B = 8192    # below this, one block (fixed per-step cost dominates)


# ---------------------------------------------------------------------------
# Parameter initialization (mirrors DynamicsSimulatorLayer.__init__ semantics:
# value = base + span * (+/-1) * U[0,1) per pulse, deterministic RNG).
# ---------------------------------------------------------------------------
def init_pulse_parameters(seed: int = 0) -> dict[str, jnp.ndarray]:
    generic_parameters = [
        ('durations', 65.0, 15.0),
        ('moduli', 1.73, 0.7),
        ('arguments', 0.0, np.pi / 4),
        ('sigmas', 80.0, 10.0),
        ('betas', 0.7, 0.1),
        ('phases', 0.0, np.pi / 4),
    ]
    rng = np.random.default_rng(seed)
    params = {}
    for name, base, span in generic_parameters:
        for i, num_pulses in enumerate(PULSE_ARRAY):
            direction = np.power(-1.0, np.round(rng.random(num_pulses)))
            noise = span * direction * rng.random(num_pulses)
            params[f'{name}_{i}'] = jnp.asarray(base + noise, dtype=jnp.float32)
    return params


# ---------------------------------------------------------------------------
# Stand-in for the external simulator (AbstractDynamicsSimulator).
# ---------------------------------------------------------------------------
def build_unitary(params: dict[str, jnp.ndarray]) -> jnp.ndarray:
    # TODO(synk): the true qiskit-dynamics pulse-level Schrodinger evolution done by
    # DynamicsSimulatorFunction/AbstractDynamicsSimulator is an external black box with
    # no Pallas equivalent; we substitute a parameter-derived unitary U = expm(-i H(theta)).
    X = np.array([[0.0, 1.0], [1.0, 0.0]], dtype=np.complex64)
    Y = np.array([[0.0, -1.0j], [1.0j, 0.0]], dtype=np.complex64)
    I2 = np.eye(2, dtype=np.complex64)

    def embed(op: np.ndarray, q: int) -> np.ndarray:
        mats = [I2] * NUM_QUBITS
        mats[q] = op
        out = mats[0]
        for m in mats[1:]:
            out = np.kron(out, m)
        return out

    H = jnp.zeros((DIM, DIM), dtype=jnp.complex64)
    for q in range(NUM_QUBITS):
        # "moduli should be the values AFTER the sigmoid (between 1 and -1)"
        eff_mod = jnp.tanh(params[f'moduli_{q}'])
        amp = jnp.sum(eff_mod * params[f'durations_{q}'] /
                      (params[f'sigmas_{q}'] + 1e-6))
        phi = jnp.mean(params[f'phases_{q}'] + params[f'arguments_{q}'])
        beta = jnp.mean(params[f'betas_{q}'])
        Xq = jnp.asarray(embed(X, q))
        Yq = jnp.asarray(embed(Y, q))
        H = H + amp * (jnp.cos(phi) * Xq + beta * jnp.sin(phi) * Yq)
    return jax.scipy.linalg.expm(-1j * H)


# ---------------------------------------------------------------------------
# Glue: components of coefficients -> unnormalized packed statevector.
# initial_comps row = [a_1, b_1, phase_b_1, c_1, phase_c_1, ...], length 2*DIM-1.
# Output: (2*DIM, B) float32 = [psi_re ; psi_im] with batch on the lane axis.
# ---------------------------------------------------------------------------
def comps_to_state(initial_comps: jnp.ndarray) -> jnp.ndarray:
    a0 = initial_comps[:, 0:1]
    mods = initial_comps[:, 1::2]
    phs = initial_comps[:, 2::2]
    psi_re = jnp.concatenate([a0, mods * jnp.cos(phs)], axis=-1)          # (B, D)
    psi_im = jnp.concatenate([jnp.zeros_like(a0), mods * jnp.sin(phs)], axis=-1)
    packed = jnp.concatenate([psi_re.T, psi_im.T], axis=0)                # (2D, B)
    return packed.astype(jnp.float32)


# ---------------------------------------------------------------------------
# Pallas kernel.
#   psi_ref : (2D, Bb)   packed [psi_re ; psi_im] columns (unnormalized)
#   w_ref   : (2D, Bb)   packed [V_re ; V_im] with V = conj(target) @ U
#   fid_ref : (1, Bb)    lane-dense fidelities
# overlap_b = sum_i V[b,i] * psi[b,i]  (U^dagger already folded into V).
# ---------------------------------------------------------------------------
def _fidelity_kernel(psi_ref, w_ref, fid_ref):
    psi = psi_ref[...]                                         # (2D, Bb)
    w = w_ref[...]                                             # (2D, Bb)

    # |psi|^2 per column (normalization is folded into the final fidelity).
    norm2 = jnp.sum(psi * psi, axis=0, keepdims=True)          # (1, Bb)

    psi_re, psi_im = psi[:DIM, :], psi[DIM:, :]
    w_re, w_im = w[:DIM, :], w[DIM:, :]

    # Complex inner product <target | U psi> per column (pure VPU + reduce).
    ov_re = jnp.sum(w_re * psi_re - w_im * psi_im, axis=0, keepdims=True)
    ov_im = jnp.sum(w_re * psi_im + w_im * psi_re, axis=0, keepdims=True)

    # Exact reciprocal (approx rcp's ~1e-3 error would break rtol=1e-4); the
    # epsilon keeps padded all-zero columns at 0 instead of NaN.
    fid_ref[...] = (ov_re * ov_re + ov_im * ov_im) * pl.reciprocal(norm2 + 1e-12)


# ---------------------------------------------------------------------------
# Block selection: big, generation-aware batch blocks on the lane axis.
# ---------------------------------------------------------------------------
def _target_block_lanes() -> int:
    # ~1 MiB per streamed (2D, block) f32 operand on v6e/v7x; v5e's lower HBM
    # bandwidth / 16 MiB default scoped VMEM prefer a smaller block.
    try:
        kind = jax.devices()[0].device_kind.lower()
    except Exception:
        kind = ""
    if "v5" in kind:
        return 16384
    return 32768


def _choose_blocks(batch: int) -> tuple[int, int, int]:
    target = _target_block_lanes()
    b128 = max(LANE, ((batch + LANE - 1) // LANE) * LANE)
    nblk = -(-b128 // target)                       # ceil
    if nblk == 1 and b128 >= SPLIT_THRESHOLD_B:
        nblk = 2                                    # feed both v7x TensorCores
    block_b = ((-(-b128 // nblk)) + LANE - 1) // LANE * LANE
    b_pad = block_b * nblk
    return block_b, b_pad, nblk


def _fidelity_pallas(psi_packed: jnp.ndarray,
                     w_packed: jnp.ndarray,
                     block_b: int,
                     nblk: int) -> jnp.ndarray:
    b_pad = psi_packed.shape[1]
    return pl.pallas_call(
        _fidelity_kernel,
        out_shape=jax.ShapeDtypeStruct((1, b_pad), jnp.float32),
        grid_spec=pltpu.PrefetchScalarGridSpec(
            num_scalar_prefetch=0,
            grid=(nblk,),
            in_specs=[
                pl.BlockSpec((TWO_DIM, block_b), lambda i: (0, i)),
                pl.BlockSpec((TWO_DIM, block_b), lambda i: (0, i)),
            ],
            out_specs=pl.BlockSpec((1, block_b), lambda i: (0, i)),
        ),
        compiler_params=pltpu.CompilerParams(
            dimension_semantics=("parallel",)),
    )(psi_packed, w_packed)


# ---------------------------------------------------------------------------
# DynamicsSimulatorNet forward: fids = f(initial_states, target_states; params)
# ---------------------------------------------------------------------------
class DynamicsSimulatorNet:
    def __init__(self, seed: int = 0):
        self.params = init_pulse_parameters(seed)

    def forward(self, initial_comps: jnp.ndarray, target_states: jnp.ndarray) -> jnp.ndarray:
        B = initial_comps.shape[0]
        block_b, b_pad, nblk = _choose_blocks(B)
        pad = b_pad - B

        U = build_unitary(self.params)                        # (D, D) complex64 (glue)

        # Fold U^dagger into the target once (tiny XLA matmul):
        #   overlap_b = sum_i V[b,i] * psi[b,i],  V = conj(target) @ U
        V = jnp.conj(target_states.astype(jnp.complex64)) @ U  # (B, D) complex64

        # Pad the SMALL per-batch inputs before packing so the packed slabs are
        # built directly at padded width (no second full-size pad pass), and the
        # pad quantum is 128*nblk, not block_b.
        comps = initial_comps.astype(jnp.float32)
        if pad:
            comps = jnp.pad(comps, ((0, pad), (0, 0)))
            V = jnp.pad(V, ((0, pad), (0, 0)))

        psi_packed = comps_to_state(comps)                                   # (2D, b_pad)
        w_packed = jnp.concatenate([jnp.real(V).T, jnp.imag(V).T],
                                   axis=0).astype(jnp.float32)               # (2D, b_pad)

        fid = _fidelity_pallas(psi_packed, w_packed, block_b, nblk)
        return fid[0, :B]


# Pure-JAX reference for a sanity check.
def _reference(initial_comps, target_states, params):
    U = build_unitary(params)
    a0 = initial_comps[:, 0:1]
    mods = initial_comps[:, 1::2]
    phs = initial_comps[:, 2::2]
    psi_re = jnp.concatenate([a0, mods * jnp.cos(phs)], axis=-1)
    psi_im = jnp.concatenate([jnp.zeros_like(a0), mods * jnp.sin(phs)], axis=-1)
    psi = psi_re + 1j * psi_im
    psi = psi / jnp.linalg.norm(psi, axis=-1, keepdims=True)
    evolved = psi @ U.T
    overlap = jnp.sum(jnp.conj(target_states) * evolved, axis=-1)
    return jnp.abs(overlap) ** 2


def _make_inputs(key, B):
    k1, k2, k3, k4 = jax.random.split(key, 4)
    # initial_comps: [a, b, phase_b, c, phase_c, d, phase_d] per row (2*DIM-1 = 7)
    mods = jax.random.uniform(k1, (B, DIM), minval=0.1, maxval=1.0)
    phs = jax.random.uniform(k2, (B, DIM - 1), minval=-np.pi, maxval=np.pi)
    comps_list = [mods[:, 0:1]]
    for j in range(DIM - 1):
        comps_list.append(mods[:, j + 1:j + 2])
        comps_list.append(phs[:, j:j + 1])
    initial_comps = jnp.concatenate(comps_list, axis=-1).astype(jnp.float32)
    # target_states: random normalized row statevectors (complex64)
    t_re = jax.random.normal(k3, (B, DIM))
    t_im = jax.random.normal(k4, (B, DIM))
    target = (t_re + 1j * t_im).astype(jnp.complex64)
    target = target / jnp.linalg.norm(target, axis=-1, keepdims=True)
    return initial_comps, target


if __name__ == "__main__":
    net = DynamicsSimulatorNet(seed=0)
    key = jax.random.PRNGKey(0)

    # Small primary case (B=8) plus a non-multiple-of-128 case to exercise padding.
    for idx, B in enumerate((8, 333)):
        initial_comps, target = _make_inputs(jax.random.fold_in(key, idx), B)
        fids = net.forward(initial_comps, target)
        fids = jax.block_until_ready(fids)
        ref = _reference(initial_comps, target, net.params)
        np.testing.assert_allclose(np.asarray(fids), np.asarray(ref),
                                   rtol=1e-4, atol=1e-5)

    print("KERNEL_OK")
</pallas_src>

<mosaic_0001>
module attributes {stable_mosaic.version = 11 : i64} {
  func.func @_fidelity_kernel(%arg0: i32, %arg1: memref<8x128xf32, #tpu.memory_space<vmem>>, %arg2: memref<8x128xf32, #tpu.memory_space<vmem>>, %arg3: memref<1x128xf32, #tpu.memory_space<vmem>>) attributes {dimension_semantics = [#tpu.dimension_semantics<parallel>], iteration_bounds = array<i64: 1>, scalar_prefetch = 0 : i64, scratch_operands = 0 : i64, tpu.core_type = #tpu.core_type<tc>, window_params = [{transform_indices = @transform_0, window_bounds = array<i64: 8, 128>}, {transform_indices = @transform_1, window_bounds = array<i64: 8, 128>}, {transform_indices = @transform_2, window_bounds = array<i64: 1, 128>}]} {
    %c0 = arith.constant 0 : index
    %c0_0 = arith.constant 0 : index
    %0 = vector.load %arg1[%c0, %c0_0] : memref<8x128xf32, #tpu.memory_space<vmem>>, vector<8x128xf32>
    %c0_1 = arith.constant 0 : index
    %c0_2 = arith.constant 0 : index
    %1 = vector.load %arg2[%c0_1, %c0_2] : memref<8x128xf32, #tpu.memory_space<vmem>>, vector<8x128xf32>
    %2 = arith.mulf %0, %0 : vector<8x128xf32>
    %cst = arith.constant dense<0.000000e+00> : vector<128xf32>
    %3 = vector.multi_reduction <add>, %2, %cst [0] : vector<8x128xf32> to vector<128xf32>
    %4 = vector.shape_cast %3 : vector<128xf32> to vector<1x128xf32>
    %5 = vector.extract_strided_slice %0 {offsets = [0, 0], sizes = [4, 128], strides = [1, 1]} : vector<8x128xf32> to vector<4x128xf32>
    %6 = vector.extract_strided_slice %0 {offsets = [4, 0], sizes = [4, 128], strides = [1, 1]} : vector<8x128xf32> to vector<4x128xf32>
    %7 = vector.extract_strided_slice %1 {offsets = [0, 0], sizes = [4, 128], strides = [1, 1]} : vector<8x128xf32> to vector<4x128xf32>
    %8 = vector.extract_strided_slice %1 {offsets = [4, 0], sizes = [4, 128], strides = [1, 1]} : vector<8x128xf32> to vector<4x128xf32>
    %9 = arith.mulf %7, %5 : vector<4x128xf32>
    %10 = arith.mulf %8, %6 : vector<4x128xf32>
    %11 = arith.subf %9, %10 : vector<4x128xf32>
    %cst_3 = arith.constant dense<0.000000e+00> : vector<128xf32>
    %12 = vector.multi_reduction <add>, %11, %cst_3 [0] : vector<4x128xf32> to vector<128xf32>
    %13 = vector.shape_cast %12 : vector<128xf32> to vector<1x128xf32>
    %14 = arith.mulf %7, %6 : vector<4x128xf32>
    %15 = arith.mulf %8, %5 : vector<4x128xf32>
    %16 = arith.addf %14, %15 : vector<4x128xf32>
    %cst_4 = arith.constant dense<0.000000e+00> : vector<128xf32>
    %17 = vector.multi_reduction <add>, %16, %cst_4 [0] : vector<4x128xf32> to vector<128xf32>
    %18 = vector.shape_cast %17 : vector<128xf32> to vector<1x128xf32>
    %19 = arith.mulf %13, %13 : vector<1x128xf32>
    %20 = arith.mulf %18, %18 : vector<1x128xf32>
    %21 = arith.addf %19, %20 : vector<1x128xf32>
    %cst_5 = arith.constant 9.99999996E-13 : f32
    %22 = vector.broadcast %cst_5 : f32 to vector<1x128xf32>
    %23 = arith.addf %4, %22 : vector<1x128xf32>
    %24 = tpu.reciprocal %23 : vector<1x128xf32> -> vector<1x128xf32>
    %25 = arith.mulf %21, %24 : vector<1x128xf32>
    %c0_6 = arith.constant 0 : index
    %c0_7 = arith.constant 0 : index
    %26 = vector.load %arg3[%c0_6, %c0_7] : memref<1x128xf32, #tpu.memory_space<vmem>>, vector<1x128xf32>
    tpu.vector_store %arg3[%c0_6, %c0_7], %25 {strides = array<i32>} : memref<1x128xf32, #tpu.memory_space<vmem>>, vector<1x128xf32>,
    return
  }
  func.func @transform_0(%arg0: i32) -> (i32, i32) {
    %c0_i32 = arith.constant 0 : i32
    %c0_i32_0 = arith.constant 0 : i32
    return %c0_i32, %arg0 : i32, i32
  }
  func.func @transform_1(%arg0: i32) -> (i32, i32) {
    %c0_i32 = arith.constant 0 : i32
    %c0_i32_0 = arith.constant 0 : i32
    return %c0_i32, %arg0 : i32, i32
  }
  func.func @transform_2(%arg0: i32) -> (i32, i32) {
    %c0_i32 = arith.constant 0 : i32
    %c0_i32_0 = arith.constant 0 : i32
    return %c0_i32, %arg0 : i32, i32
  }
}

</mosaic_0001>

<bundles_post_ra>
// kernel: tpu_custom_call.1
= control target key start
LH: loop header
LB: loop body
LE: loop exit
PB: predicated region body
PF: predicated region fallthrough
CT: control target
= control target key end

     0   :  { %7 = vsyncpa [#allocation3], 0  ;;  %s227_s0 = inlined_call_operand.hbm [shape: f32[8,128], index: 0, kind: input, shape index: {}]   ;;  %s228_s1 = inlined_call_operand.hbm [shape: f32[8,128], index: 1, kind: input, shape index: {}]   ;;  %s229_s2 = inlined_call_operand.hbm [shape: f32[1,128], index: 2, kind: output, shape index: {}]  }
   0x1   :  { %8 = vsyncpa [#allocation6], 0 }
   0x2   :  { %9 = vsyncpa [#allocation4], 0  ;;  %s173_s9 = smov [#allocation2]   ;;  %s174_s11 = smov [#allocation5]  }
   0x3   :  { %s16_s10 = sshll.u32 %s173_s9, 4  ;;  %s26_s12 = sshll.u32 %s174_s11, 4  ;;  %s17_s10 = int_to_ptr.vmem [resolvable:$true] %s16_s10  ;;  %s27_s12 = int_to_ptr.vmem [resolvable:$true] %s26_s12 }
   0x4   :  { %s101_s15 = scalar_lea.hbm %s227_s0, 128 }
   0x5   :  { %p102_p0 = scmp.ne.s32.totalorder %s227_s0, %s101_s15  ;;  %p105_p1 = scmp.lt.u32.totalorder %s101_s15, %s227_s0 }
   0x7   :  { %p107_p2 = pnand %p105_p1, %p102_p0 }
   0x9   :  { %110 = shalt.err (!%p107_p2)
}
   0xa   :  { %s111_s20 = scalar_lea.vmem %s17_s10, 128  ;;  %p116_p4 = scmp.lt.s32.totalorder %s17_s10, %s17_s10 }
   0xb   :  { %p112_p3 = scmp.ne.s32.totalorder %s17_s10, %s111_s20  ;;  %p117_p5 = scmp.lt.s32.totalorder %s111_s20, %s111_s20 }
   0xd   :  { %p118_p6 = por %p117_p5, %p116_p4 }
   0xf   :  { %p119_p7 = pnand %p118_p6, %p112_p3 }
  0x11   :  { %122 = shalt.err (!%p119_p7)
}
  0x12   :  { %19 = dma.hbm_to_vmem [thread:$0]  %s227_s0, 128, %s17_s10, [#allocation3]  }
  0x13   :  { %s123_s25 = scalar_lea.hbm %s228_s1, 128 }
  0x14   :  { %p124_p8 = scmp.ne.s32.totalorder %s228_s1, %s123_s25  ;;  %p127_p9 = scmp.lt.u32.totalorder %s123_s25, %s228_s1 }
  0x16   :  { %p129_p10 = pnand %p127_p9, %p124_p8 }
  0x18   :  { %132 = shalt.err (!%p129_p10)
}
  0x19   :  { %s133_s30 = scalar_lea.vmem %s27_s12, 128  ;;  %p138_p12 = scmp.lt.s32.totalorder %s27_s12, %s27_s12 }
  0x1a   :  { %p134_p11 = scmp.ne.s32.totalorder %s27_s12, %s133_s30  ;;  %p139_p13 = scmp.lt.s32.totalorder %s133_s30, %s133_s30 }
  0x1c   :  { %p140_p0 = por %p139_p13, %p138_p12 }
  0x1e   :  { %p141_p1 = pnand %p140_p0, %p134_p11 }
  0x20   :  { %144 = shalt.err (!%p141_p1)
}
  0x21   :  { %29 = dma.hbm_to_vmem [thread:$0]  %s228_s1, 128, %s27_s12, [#allocation6]  }
  0x22   :  { %167 = dma.done.wait [#allocation3], 128  }
  0x23   :  { %168 = vsyncadd [#allocation3], 4294967168 }
  0x24   :  { %169 = dma.done.wait [#allocation6], 128  }
  0x25   :  { %170 = vsyncadd [#allocation6], 4294967168  ;;  %v36_v0 = vld [vmem:[#allocation2] sm:$0xff]  ;;  %v37_v1 = vld [vmem:[#allocation5] sm:$0xff]  ;;  %vm50_vm0 = vcmask 1043456   ;;  %s175_s1 = smov [#allocation7]  }
  0x26   :  { %v38_v2 = vmul.f32 %v36_v0, %v36_v0  ;;  %v45_v3 = vmul.f32 %v37_v1, %v36_v0  ;;  %v59_v4 = vrot.slane %v36_v0, 4  ;;  %s86_s4 = sshll.u32 %s175_s1, 4  ;;  %s87_s4 = int_to_ptr.vmem [resolvable:$true] %s86_s4 }
  0x27   :  { %s145_s5 = scalar_lea.vmem %s87_s4, 16  ;;  %s149_s6 = scalar_lea.vmem %s87_s4, 32 }
  0x28   :  { %v39_v5 = vrot.slane %v38_v2, 4  ;;  %v47_v6 = vrot.slane %v45_v3, 4  ;;  %v61_v7 = vmul.f32 %v59_v4, %v37_v1  ;;  %p146_p2 = scmp.ne.s32.totalorder %s87_s4, %s145_s5  ;;  %p150_p3 = scmp.lt.s32.totalorder %s87_s4, %s87_s4 }
  0x29   :  { %p151_p4 = scmp.lt.s32.totalorder %s149_s6, %s145_s5 }
  0x2a   :  { %v40_v8 = vadd.f32 %v39_v5, %v38_v2  ;;  %v49_v9 = vsub.f32 %v45_v3, %v47_v6  ;;  %v63_v10 = vrot.slane %v61_v7, 4 }
  0x2b   :  { %p152_p5 = por %p151_p4, %p150_p3 }
  0x2c   :  { %v41_v11 = vrot.slane %v40_v8, 2  ;;  %v51_v12 = vsel %vm50_vm0, %v49_v9, 0.0  ;;  %v65_v13 = vadd.f32 %v63_v10, %v61_v7 }
  0x2d   :  { %v52_v14 = vrot.slane %v51_v12, 4  ;;  %p153_p6 = pnand %p152_p5, %p146_p2 }
  0x2e   :  { %v42_v15 = vadd.f32 %v41_v11, %v40_v8  ;;  %v66_v16 = vsel %vm50_vm0, %v65_v13, 0.0 }
  0x2f   :  { %v53_v17 = vadd.f32 %v52_v14, %v51_v12  ;;  %v67_v18 = vrot.slane %v66_v16, 4 }
  0x30   :  { %v43_v19 = vrot.slane %v42_v15, 1 }
  0x31   :  { %v54_v20 = vrot.slane %v53_v17, 2  ;;  %v68_v21 = vadd.f32 %v67_v18, %v66_v16 }
  0x32   :  { %v44_v22 = vadd.f32 %v43_v19, %v42_v15 }
  0x33   :  { %v55_v23 = vadd.f32 %v54_v20, %v53_v17  ;;  %v69_v24 = vrot.slane %v68_v21, 2 }
  0x34   :  { %v76_v25 = vadd.f32 1e-12, %v44_v22 }
  0x35   :  { %v56_v26 = vrot.slane %v55_v23, 1  ;;  %v70_v27 = vadd.f32 %v69_v24, %v68_v21 }
  0x36   :  { %99 = vrcp.f32 %v76_v25 }
  0x37   :  { %v57_v28 = vadd.f32 %v56_v26, %v55_v23  ;;  %v71_v29 = vrot.slane %v70_v27, 1 }
  0x39   :  { %v72_v30 = vadd.f32 %v71_v29, %v70_v27  ;;  %v73_v31 = vmul.f32 %v57_v28, %v57_v28 }
  0x3b   :  { %v74_v32 = vmul.f32 %v72_v30, %v72_v30 }
  0x3d   :  { %v75_v33 = vadd.f32 %v74_v32, %v73_v31 }
  0x40   :  { %v100_v34 = vpop.eup %99 }
  0x41   :  { %v78_v35 = vmul.f32 %v100_v34, %v75_v33 }
  0x43   :  { %79 = vst [vmem:[#allocation7] sm:$0x1] %v78_v35 }
  0x44   :  { %156 = shalt.err (!%p153_p6)
}
  0x45   :  { %s157_s9 = scalar_lea.hbm %s229_s2, 16 }
  0x46   :  { %p158_p7 = scmp.ne.s32.totalorder %s229_s2, %s157_s9  ;;  %p161_p8 = scmp.lt.u32.totalorder %s157_s9, %s229_s2 }
  0x48   :  { %p163_p9 = pnand %p161_p8, %p158_p7 }
  0x4a   :  { %166 = shalt.err (!%p163_p9)
}
  0x4b   :  { %89 = dma.vmem_to_hbm [thread:$0]  %s87_s4, 16, %s229_s2, [#allocation4]  }
  0x4c   :  { %171 = dma.done.wait [#allocation4], 16  }
  0x4d   :  { %172 = vsyncadd [#allocation4], 4294967280 }
  0x4e   :  { %93 = vsyncpa [#allocation3], 1 }
  0x4f   :  { %94 = vsyncpa [#allocation6], 1 }
  0x50   :  { %95 = vsyncpa [#allocation4], 1 }

</bundles_post_ra>
